<compile_context>
chip_gen: v7x
topology: tpu7x:2x2x1
jax: 0.10.0
libtpu: 0.0.40
codegen_flags: <defaults>
</compile_context>

<pallas_src>
from functools import partial

import jax
import jax.numpy as jnp
from jax.experimental import pallas as pl
from jax.experimental.pallas import tpu as pltpu

# ---- "config" (synthetic, small) -------------------------------------------
BATCH = 2
SEQ = 8            # query_length == key_length (no layer_past)
HIDDEN = 32        # embed_dim
NUM_HEADS = 4
HEAD_DIM = HIDDEN // NUM_HEADS
MAX_POSITIONS = 64
WINDOW_SIZE = 4
ATTENTION_LAYERS = ("global", "local")
LAYER_ID = 0
ATTENTION_TYPE = ATTENTION_LAYERS[LAYER_ID]   # 'global' for layer 0


def _attn_kernel(x_ref, wq_ref, wk_ref, wv_ref, wo_ref, bo_ref, bias_ref, o_ref,
                 *, num_heads, batches_per_block, compute_dtype):
    H = num_heads
    bpb = batches_per_block

    x = x_ref[...]                                    # (bpb, T, E)
    _, T, E = x.shape
    G = wq_ref.shape[0]                               # H * bpb (expanded in wrapper)

    # Replicate the activation block across heads so every (head, batch) pair
    # becomes one entry of a single leading batch dim g = h*bpb + b.
    # broadcast + leading-dim merge only: layout no-ops, no XLU relayout.
    xg = jnp.broadcast_to(x[None], (H, bpb, T, E)).reshape(G, T, E)
    xg = xg.astype(compute_dtype)

    # q/k/v projections: one head-batched einsum each, (T,E)@(E,D) on the MXU.
    q = jnp.einsum("gte,ged->gtd", xg, wq_ref[...],
                   preferred_element_type=jnp.float32)        # (G, T, D)
    k = jnp.einsum("gte,ged->gtd", xg, wk_ref[...],
                   preferred_element_type=jnp.float32)
    v = jnp.einsum("gte,ged->gtd", xg, wv_ref[...],
                   preferred_element_type=jnp.float32)

    # GPT-Neo: UNscaled scores, q/k in float32, contraction over D (no .T).
    s = jnp.einsum("gtd,gsd->gts",
                   q.astype(jnp.float32), k.astype(jnp.float32),
                   preferred_element_type=jnp.float32)        # (G, T, T)

    # Additive causal/local mask (precomputed on host, hoisted broadcast),
    # clamped so masked entries equal finfo.min exactly (torch.where parity).
    mask_value = jnp.finfo(jnp.float32).min
    bias = jnp.broadcast_to(bias_ref[...][None], (G, T, T))
    s = jnp.maximum(s + bias, mask_value)

    # Softmax in f32 (attn_dropout p=0 -> identity; exact division for parity).
    m = jnp.max(s, axis=-1, keepdims=True)
    e = jnp.exp(s - m)
    l = jnp.sum(e, axis=-1, keepdims=True)
    p = e / l

    # attn @ v, then fused head-merge + out_proj:  out = sum_h O_h @ Wo_h + b.
    o = jnp.einsum("gts,gsd->gtd",
                   p.astype(compute_dtype), v.astype(compute_dtype),
                   preferred_element_type=jnp.float32)        # (G, T, D)
    og = jnp.einsum("gtd,gde->gte", o.astype(compute_dtype), wo_ref[...],
                    preferred_element_type=jnp.float32)       # (G, T, E)
    out = jnp.sum(og.reshape(H, bpb, T, E), axis=0) + bo_ref[...]   # (bpb, T, E)

    # resid_dropout p=0 -> identity.
    o_ref[...] = out.astype(o_ref.dtype)


def gpt_neo_attention(hidden_states, wq, wk, wv, wo, bo, *,
                      num_heads=NUM_HEADS,
                      attention_type=ATTENTION_TYPE,
                      window_size=WINDOW_SIZE,
                      batches_per_block=None,
                      compute_dtype=jnp.float32):
    """hidden_states: [B, T, E]; wq/wk/wv/wo: torch-layout [out, in]; bo: [E].

    Returns (attn_output, present) with present=None (use_cache=False path).

    batches_per_block: batch rows handled per grid step.  None (default) ->
      whole batch in ONE invocation (lowest fixed overhead, v5e/v6e).  Use 1
      on v7x so a 2-wide "parallel" axis feeds both TensorCores.
    compute_dtype: dtype fed to the MXU (f32 accumulation).  float32 matches
      the PyTorch module; bfloat16 recommended on v6e/v7x at real sizes.
    """
    B, T, E = hidden_states.shape
    H = num_heads
    D = E // H
    assert H * D == E

    bpb = B if batches_per_block is None else batches_per_block
    assert B % bpb == 0
    num_blocks = B // bpb
    G = H * bpb

    # ---- host-side (free) weight prep -------------------------------------
    # torch Linear: y = x @ W.T with W [out, in].  Pre-transpose + pre-split
    # heads so the kernel never slices lanes, transposes or concatenates:
    #   wq_h[h] = W_q.T[:, h*D:(h+1)*D]  (E, D)   ;   wo_h[h] = W_o.T[h*D:(h+1)*D, :]  (D, E)
    # Each head is then replicated bpb times so group g = h*bpb + b uses head h.
    # (Replication is only a few KiB at toy size; use batches_per_block=1 at
    #  production sizes so no replication happens.)
    def split_in_heads(w):                    # (E,E) torch [out,in] -> (H, E, D)
        return w.T.reshape(E, H, D).transpose(1, 0, 2)

    wq_g = jnp.repeat(split_in_heads(wq), bpb, axis=0).astype(compute_dtype)    # (G, E, D)
    wk_g = jnp.repeat(split_in_heads(wk), bpb, axis=0).astype(compute_dtype)
    wv_g = jnp.repeat(split_in_heads(wv), bpb, axis=0).astype(compute_dtype)
    wo_g = jnp.repeat(wo.T.reshape(H, D, E), bpb, axis=0).astype(compute_dtype)  # (G, D, E)
    bo_2d = bo.reshape(1, E).astype(jnp.float32)

    # Additive causal / local-banded mask (== the registered `bias` buffer
    # sliced to [key_len - q_len : key_len, :key_len] with q_len == key_len).
    rows = jnp.arange(T)[:, None]
    cols = jnp.arange(T)[None, :]
    allowed = cols <= rows
    if attention_type == "local":
        allowed = jnp.logical_and(allowed, cols > rows - window_size)
    mask_bias = jnp.where(allowed, 0.0,
                          jnp.finfo(jnp.float32).min).astype(jnp.float32)        # (T, T)

    kernel = partial(_attn_kernel, num_heads=H, batches_per_block=bpb,
                     compute_dtype=compute_dtype)

    # Advisory cost estimate so XLA schedules surrounding ops around the call.
    cost = pl.CostEstimate(
        flops=8 * B * T * E * E + 4 * B * H * T * T * D,
        transcendentals=B * H * T * T,
        bytes_accessed=4 * (2 * B * T * E + 4 * E * E + T * T + E),
    )

    attn_output = pl.pallas_call(
        kernel,
        out_shape=jax.ShapeDtypeStruct((B, T, E), hidden_states.dtype),
        grid_spec=pltpu.PrefetchScalarGridSpec(
            num_scalar_prefetch=0,
            grid=(num_blocks,),
            in_specs=[
                pl.BlockSpec((bpb, T, E), lambda i: (i, 0, 0)),    # hidden_states
                pl.BlockSpec((G, E, D), lambda i: (0, 0, 0)),      # Wq (per head group)
                pl.BlockSpec((G, E, D), lambda i: (0, 0, 0)),      # Wk
                pl.BlockSpec((G, E, D), lambda i: (0, 0, 0)),      # Wv
                pl.BlockSpec((G, D, E), lambda i: (0, 0, 0)),      # Wo
                pl.BlockSpec((1, E), lambda i: (0, 0)),            # out_proj bias
                pl.BlockSpec((T, T), lambda i: (0, 0)),            # additive mask
            ],
            out_specs=pl.BlockSpec((bpb, T, E), lambda i: (i, 0, 0)),
        ),
        compiler_params=pltpu.CompilerParams(
            dimension_semantics=("parallel",)),
        cost_estimate=cost,
    )(hidden_states, wq_g, wk_g, wv_g, wo_g, bo_2d, mask_bias)

    present = None   # use_cache=False path of the PyTorch forward
    return attn_output, present


def _reference(hidden_states, wq, wk, wv, wo, bo, *, num_heads=NUM_HEADS,
               attention_type=ATTENTION_TYPE, window_size=WINDOW_SIZE):
    """Plain-JAX reference mirroring the PyTorch forward (for sanity check)."""
    B, T, E = hidden_states.shape
    H = num_heads
    D = E // H
    x = hidden_states.astype(jnp.float32)
    q = x @ wq.T
    k = x @ wk.T
    v = x @ wv.T

    def split(t):
        return t.reshape(B, T, H, D).transpose(0, 2, 1, 3)   # [B, H, T, D]

    q, k, v = split(q), split(k), split(v)
    s = jnp.einsum("bhtd,bhsd->bhts", q, k)                  # no 1/sqrt(d) scaling
    rows = jnp.arange(T)[:, None]
    cols = jnp.arange(T)[None, :]
    causal = cols <= rows
    if attention_type == "local":
        causal = jnp.logical_and(causal, cols > rows - window_size)
    s = jnp.where(causal[None, None], s, jnp.finfo(jnp.float32).min)
    p = jax.nn.softmax(s, axis=-1)
    o = jnp.einsum("bhts,bhsd->bhtd", p, v)
    o = o.transpose(0, 2, 1, 3).reshape(B, T, E)
    return o @ wo.T + bo[None, None, :]


if __name__ == "__main__":
    key = jax.random.PRNGKey(0)
    kx, kq, kk, kv, ko, kb = jax.random.split(key, 6)

    hidden_states = jax.random.normal(kx, (BATCH, SEQ, HIDDEN), dtype=jnp.float32)
    scale = 0.02
    wq = scale * jax.random.normal(kq, (HIDDEN, HIDDEN), dtype=jnp.float32)  # [out, in]
    wk = scale * jax.random.normal(kk, (HIDDEN, HIDDEN), dtype=jnp.float32)
    wv = scale * jax.random.normal(kv, (HIDDEN, HIDDEN), dtype=jnp.float32)
    wo = scale * jax.random.normal(ko, (HIDDEN, HIDDEN), dtype=jnp.float32)
    bo = scale * jax.random.normal(kb, (HIDDEN,), dtype=jnp.float32)

    attn_output, present = gpt_neo_attention(hidden_states, wq, wk, wv, wo, bo)
    attn_output = jax.block_until_ready(attn_output)

    ref = _reference(hidden_states, wq, wk, wv, wo, bo)
    assert attn_output.shape == (BATCH, SEQ, HIDDEN)
    assert present is None
    assert jnp.allclose(attn_output, ref, atol=1e-4, rtol=1e-4), "mismatch vs reference"

    print("KERNEL_OK")
</pallas_src>

<mosaic_0001>
module attributes {stable_mosaic.version = 11 : i64} {
  func.func @_attn_kernel(%arg0: i32, %arg1: memref<2x8x32xf32, #tpu.memory_space<vmem>>, %arg2: memref<8x32x8xf32, #tpu.memory_space<vmem>>, %arg3: memref<8x32x8xf32, #tpu.memory_space<vmem>>, %arg4: memref<8x32x8xf32, #tpu.memory_space<vmem>>, %arg5: memref<8x8x32xf32, #tpu.memory_space<vmem>>, %arg6: memref<1x32xf32, #tpu.memory_space<vmem>>, %arg7: memref<8x8xf32, #tpu.memory_space<vmem>>, %arg8: memref<2x8x32xf32, #tpu.memory_space<vmem>>) attributes {dimension_semantics = [#tpu.dimension_semantics<parallel>], iteration_bounds = array<i64: 1>, scalar_prefetch = 0 : i64, scratch_operands = 0 : i64, tpu.core_type = #tpu.core_type<tc>, window_params = [{transform_indices = @transform_0, window_bounds = array<i64: 2, 8, 32>}, {pipeline_mode = #tpu.pipeline_mode<synchronous>, transform_indices = @transform_1, window_bounds = array<i64: 8, 32, 8>}, {pipeline_mode = #tpu.pipeline_mode<synchronous>, transform_indices = @transform_2, window_bounds = array<i64: 8, 32, 8>}, {pipeline_mode = #tpu.pipeline_mode<synchronous>, transform_indices = @transform_3, window_bounds = array<i64: 8, 32, 8>}, {pipeline_mode = #tpu.pipeline_mode<synchronous>, transform_indices = @transform_4, window_bounds = array<i64: 8, 8, 32>}, {pipeline_mode = #tpu.pipeline_mode<synchronous>, transform_indices = @transform_5, window_bounds = array<i64: 1, 32>}, {pipeline_mode = #tpu.pipeline_mode<synchronous>, transform_indices = @transform_6, window_bounds = array<i64: 8, 8>}, {transform_indices = @transform_7, window_bounds = array<i64: 2, 8, 32>}]} {
    %c0 = arith.constant 0 : index
    %c0_0 = arith.constant 0 : index
    %c0_1 = arith.constant 0 : index
    %0 = vector.load %arg1[%c0, %c0_0, %c0_1] : memref<2x8x32xf32, #tpu.memory_space<vmem>>, vector<2x8x32xf32>
    %1 = vector.shape_cast %0 : vector<2x8x32xf32> to vector<1x2x8x32xf32>
    %2 = vector.shape_cast %1 : vector<1x2x8x32xf32> to vector<1x2x8x32xf32>
    %3 = vector.broadcast %2 : vector<1x2x8x32xf32> to vector<4x2x8x32xf32>
    %4 = vector.shape_cast %3 : vector<4x2x8x32xf32> to vector<8x8x32xf32>
    %c0_2 = arith.constant 0 : index
    %c0_3 = arith.constant 0 : index
    %c0_4 = arith.constant 0 : index
    %5 = vector.load %arg2[%c0_2, %c0_3, %c0_4] : memref<8x32x8xf32, #tpu.memory_space<vmem>>, vector<8x32x8xf32>
    "tpu.trace_start"() <{level = 10 : i32, message = "gte,ged->gtd"}> : () -> ()
    %cst = arith.constant dense<0.000000e+00> : vector<8x8x8xf32>
    %6 = tpu.matmul %4, %5, %cst {dimension_numbers = #tpu.dot_dimension_numbers<[2], [1], [1], [2], [0, 0, 0, 1, 1, 2], [0], [0]>} : vector<8x8x32xf32>, vector<8x32x8xf32>, vector<8x8x8xf32> -> vector<8x8x8xf32>
    "tpu.trace_stop"() : () -> ()
    %c0_5 = arith.constant 0 : index
    %c0_6 = arith.constant 0 : index
    %c0_7 = arith.constant 0 : index
    %7 = vector.load %arg3[%c0_5, %c0_6, %c0_7] : memref<8x32x8xf32, #tpu.memory_space<vmem>>, vector<8x32x8xf32>
    "tpu.trace_start"() <{level = 10 : i32, message = "gte,ged->gtd"}> : () -> ()
    %cst_8 = arith.constant dense<0.000000e+00> : vector<8x8x8xf32>
    %8 = tpu.matmul %4, %7, %cst_8 {dimension_numbers = #tpu.dot_dimension_numbers<[2], [1], [1], [2], [0, 0, 0, 1, 1, 2], [0], [0]>} : vector<8x8x32xf32>, vector<8x32x8xf32>, vector<8x8x8xf32> -> vector<8x8x8xf32>
    "tpu.trace_stop"() : () -> ()
    %c0_9 = arith.constant 0 : index
    %c0_10 = arith.constant 0 : index
    %c0_11 = arith.constant 0 : index
    %9 = vector.load %arg4[%c0_9, %c0_10, %c0_11] : memref<8x32x8xf32, #tpu.memory_space<vmem>>, vector<8x32x8xf32>
    "tpu.trace_start"() <{level = 10 : i32, message = "gte,ged->gtd"}> : () -> ()
    %cst_12 = arith.constant dense<0.000000e+00> : vector<8x8x8xf32>
    %10 = tpu.matmul %4, %9, %cst_12 {dimension_numbers = #tpu.dot_dimension_numbers<[2], [1], [1], [2], [0, 0, 0, 1, 1, 2], [0], [0]>} : vector<8x8x32xf32>, vector<8x32x8xf32>, vector<8x8x8xf32> -> vector<8x8x8xf32>
    "tpu.trace_stop"() : () -> ()
    "tpu.trace_start"() <{level = 10 : i32, message = "gtd,gsd->gts"}> : () -> ()
    %cst_13 = arith.constant dense<0.000000e+00> : vector<8x8x8xf32>
    %11 = tpu.matmul %6, %8, %cst_13 {dimension_numbers = #tpu.dot_dimension_numbers<[2], [2], [1], [1], [0, 0, 0, 1, 1, 1], [0], [0]>} : vector<8x8x8xf32>, vector<8x8x8xf32>, vector<8x8x8xf32> -> vector<8x8x8xf32>
    "tpu.trace_stop"() : () -> ()
    %c0_14 = arith.constant 0 : index
    %c0_15 = arith.constant 0 : index
    %12 = vector.load %arg7[%c0_14, %c0_15] : memref<8x8xf32, #tpu.memory_space<vmem>>, vector<8x8xf32>
    %13 = vector.shape_cast %12 : vector<8x8xf32> to vector<1x8x8xf32>
    %14 = vector.shape_cast %13 : vector<1x8x8xf32> to vector<1x8x8xf32>
    %15 = vector.broadcast %14 : vector<1x8x8xf32> to vector<8x8x8xf32>
    %16 = arith.addf %11, %15 : vector<8x8x8xf32>
    %cst_16 = arith.constant -3.40282347E+38 : f32
    %17 = vector.broadcast %cst_16 : f32 to vector<8x8x8xf32>
    %18 = arith.maximumf %16, %17 : vector<8x8x8xf32>
    %cst_17 = arith.constant dense<0xFF800000> : vector<8x8xf32>
    %19 = vector.multi_reduction <maximumf>, %18, %cst_17 [2] : vector<8x8x8xf32> to vector<8x8xf32>
    %20 = vector.shape_cast %19 : vector<8x8xf32> to vector<8x8x1xf32>
    %21 = vector.broadcast %20 : vector<8x8x1xf32> to vector<8x8x8xf32>
    %22 = arith.subf %18, %21 : vector<8x8x8xf32>
    %23 = math.exp %22 : vector<8x8x8xf32>
    %cst_18 = arith.constant dense<0.000000e+00> : vector<8x8xf32>
    %24 = vector.multi_reduction <add>, %23, %cst_18 [2] : vector<8x8x8xf32> to vector<8x8xf32>
    %25 = vector.shape_cast %24 : vector<8x8xf32> to vector<8x8x1xf32>
    %26 = vector.broadcast %25 : vector<8x8x1xf32> to vector<8x8x8xf32>
    %27 = arith.divf %23, %26 : vector<8x8x8xf32>
    "tpu.trace_start"() <{level = 10 : i32, message = "gts,gsd->gtd"}> : () -> ()
    %cst_19 = arith.constant dense<0.000000e+00> : vector<8x8x8xf32>
    %28 = tpu.matmul %27, %10, %cst_19 {dimension_numbers = #tpu.dot_dimension_numbers<[2], [1], [1], [2], [0, 0, 0, 1, 1, 2], [0], [0]>} : vector<8x8x8xf32>, vector<8x8x8xf32>, vector<8x8x8xf32> -> vector<8x8x8xf32>
    "tpu.trace_stop"() : () -> ()
    %c0_20 = arith.constant 0 : index
    %c0_21 = arith.constant 0 : index
    %c0_22 = arith.constant 0 : index
    %29 = vector.load %arg5[%c0_20, %c0_21, %c0_22] : memref<8x8x32xf32, #tpu.memory_space<vmem>>, vector<8x8x32xf32>
    "tpu.trace_start"() <{level = 10 : i32, message = "gtd,gde->gte"}> : () -> ()
    %cst_23 = arith.constant dense<0.000000e+00> : vector<8x8x32xf32>
    %30 = tpu.matmul %28, %29, %cst_23 {dimension_numbers = #tpu.dot_dimension_numbers<[2], [1], [1], [2], [0, 0, 0, 1, 1, 2], [0], [0]>} : vector<8x8x8xf32>, vector<8x8x32xf32>, vector<8x8x32xf32> -> vector<8x8x32xf32>
    "tpu.trace_stop"() : () -> ()
    %31 = vector.shape_cast %30 : vector<8x8x32xf32> to vector<4x2x8x32xf32>
    %cst_24 = arith.constant dense<0.000000e+00> : vector<2x8x32xf32>
    %32 = vector.multi_reduction <add>, %31, %cst_24 [0] : vector<4x2x8x32xf32> to vector<2x8x32xf32>
    %c0_25 = arith.constant 0 : index
    %c0_26 = arith.constant 0 : index
    %33 = vector.load %arg6[%c0_25, %c0_26] : memref<1x32xf32, #tpu.memory_space<vmem>>, vector<1x32xf32>
    %34 = vector.shape_cast %33 : vector<1x32xf32> to vector<1x1x32xf32>
    %35 = vector.broadcast %34 : vector<1x1x32xf32> to vector<2x8x32xf32>
    %36 = arith.addf %32, %35 : vector<2x8x32xf32>
    %c0_27 = arith.constant 0 : index
    %c0_28 = arith.constant 0 : index
    %c0_29 = arith.constant 0 : index
    %37 = vector.load %arg8[%c0_27, %c0_28, %c0_29] : memref<2x8x32xf32, #tpu.memory_space<vmem>>, vector<2x8x32xf32>
    tpu.vector_store %arg8[%c0_27, %c0_28, %c0_29], %36 {strides = array<i32>} : memref<2x8x32xf32, #tpu.memory_space<vmem>>, vector<2x8x32xf32>,
    return
  }
  func.func @transform_0(%arg0: i32) -> (i32, i32, i32) {
    %c0_i32 = arith.constant 0 : i32
    %c0_i32_0 = arith.constant 0 : i32
    %c0_i32_1 = arith.constant 0 : i32
    return %arg0, %c0_i32, %c0_i32_0 : i32, i32, i32
  }
  func.func @transform_1(%arg0: i32) -> (i32, i32, i32) {
    %c0_i32 = arith.constant 0 : i32
    %c0_i32_0 = arith.constant 0 : i32
    %c0_i32_1 = arith.constant 0 : i32
    %c0_i32_2 = arith.constant 0 : i32
    return %c0_i32, %c0_i32_0, %c0_i32_1 : i32, i32, i32
  }
  func.func @transform_2(%arg0: i32) -> (i32, i32, i32) {
    %c0_i32 = arith.constant 0 : i32
    %c0_i32_0 = arith.constant 0 : i32
    %c0_i32_1 = arith.constant 0 : i32
    %c0_i32_2 = arith.constant 0 : i32
    return %c0_i32, %c0_i32_0, %c0_i32_1 : i32, i32, i32
  }
  func.func @transform_3(%arg0: i32) -> (i32, i32, i32) {
    %c0_i32 = arith.constant 0 : i32
    %c0_i32_0 = arith.constant 0 : i32
    %c0_i32_1 = arith.constant 0 : i32
    %c0_i32_2 = arith.constant 0 : i32
    return %c0_i32, %c0_i32_0, %c0_i32_1 : i32, i32, i32
  }
  func.func @transform_4(%arg0: i32) -> (i32, i32, i32) {
    %c0_i32 = arith.constant 0 : i32
    %c0_i32_0 = arith.constant 0 : i32
    %c0_i32_1 = arith.constant 0 : i32
    %c0_i32_2 = arith.constant 0 : i32
    return %c0_i32, %c0_i32_0, %c0_i32_1 : i32, i32, i32
  }
  func.func @transform_5(%arg0: i32) -> (i32, i32) {
    %c0_i32 = arith.constant 0 : i32
    %c0_i32_0 = arith.constant 0 : i32
    %c0_i32_1 = arith.constant 0 : i32
    return %c0_i32, %c0_i32_0 : i32, i32
  }
  func.func @transform_6(%arg0: i32) -> (i32, i32) {
    %c0_i32 = arith.constant 0 : i32
    %c0_i32_0 = arith.constant 0 : i32
    %c0_i32_1 = arith.constant 0 : i32
    return %c0_i32, %c0_i32_0 : i32, i32
  }
  func.func @transform_7(%arg0: i32) -> (i32, i32, i32) {
    %c0_i32 = arith.constant 0 : i32
    %c0_i32_0 = arith.constant 0 : i32
    %c0_i32_1 = arith.constant 0 : i32
    return %arg0, %c0_i32, %c0_i32_0 : i32, i32, i32
  }
}

</mosaic_0001>

<bundles_post_ra>
// kernel: tpu_custom_call.1
= control target key start
LH: loop header
LB: loop body
LE: loop exit
PB: predicated region body
PF: predicated region fallthrough
CT: control target
= control target key end

     0   :  { %v4550_v3 = vmov 0.0|0.0   ;;  %vm4551_vm0 = vmmov 0   ;;  %v4552_v11 = vmov 0.0   ;;  %vm61_vm1 = vcmask 261120   ;;  %s5228_s0 = inlined_call_operand.vmem [shape: f32[2,8,32], index: 0, kind: input, shape index: {}]   ;;  %s5229_s1 = inlined_call_operand.vmem [shape: f32[8,32,8], index: 1, kind: input, shape index: {}]   ;;  %s5230_s2 = inlined_call_operand.vmem [shape: f32[8,32,8], index: 2, kind: input, shape index: {}]   ;;  %s5231_s3 = inlined_call_operand.vmem [shape: f32[8,32,8], index: 3, kind: input, shape index: {}]   ;;  %s5232_s4 = inlined_call_operand.vmem [shape: f32[8,8,32], index: 4, kind: input, shape index: {}]   ;;  %s5233_s5 = inlined_call_operand.vmem [shape: f32[1,32], index: 5, kind: input, shape index: {}]   ;;  %s5234_s6 = inlined_call_operand.vmem [shape: f32[8,8], index: 6, kind: input, shape index: {}]   ;;  %s5235_s7 = inlined_call_operand.hbm [shape: f32[2,8,32], index: 7, kind: output, shape index: {}]  }
   0x1   :  { %v29_v0 = vld [vmem:[%s5229_s1] sm:$0xff]  ;;  %v30_v1 = vld [vmem:[%s5229_s1 + $0x8] sm:$0xff]  ;;  %4344 = vmatprep.subr.bf16.mxu0 %v4550_v3  ;;  %4350 = vmatprep.subr.bf16.mxu1 %v4550_v3  ;;  %v31_v6 = vld [vmem:[%s5229_s1 + $0x10] sm:$0xff] }
   0x2   :  { %v33_v2 = vld [vmem:[%s5229_s1 + $0x20] sm:$0xff]  ;;  %v4345_v4 = vpack.c.bf16 %v30_v1, %v29_v0  ;;  %v34_v5 = vld [vmem:[%s5229_s1 + $0x28] sm:$0xff]  ;;  %v32_v7 = vld [vmem:[%s5229_s1 + $0x18] sm:$0xff]  ;;  %3968 = vmatprep.mubr.msk.f32.mxu0 %vm4551_vm0, %v4552_v11  ;;  %3979 = vmatprep.mubr.msk.f32.mxu1 %vm4551_vm0, %v4552_v11 }
   0x3   :  { %v4351_v8 = vpack.c.bf16 %v34_v5, %v33_v2  ;;  %v35_v9 = vld [vmem:[%s5229_s1 + $0x30] sm:$0xff]  ;;  %v36_v10 = vld [vmem:[%s5229_s1 + $0x38] sm:$0xff]  ;;  %v4348_v12 = vpack.c.bf16 %v32_v7, %v31_v6  ;;  %v37_v14 = vld [vmem:[%s5229_s1 + $0x40] sm:$0xff] }
   0x4   :  { %4346 = vmatpush3.bf16.msra.mxu0 %v4345_v4  ;;  %v4354_v13 = vpack.c.bf16 %v36_v10, %v35_v9  ;;  %v38_v15 = vld [vmem:[%s5229_s1 + $0x48] sm:$0xff]  ;;  %v41_v16 = vld [vmem:[%s5229_s1 + $0x60] sm:$0xff]  ;;  %v39_v22 = vld [vmem:[%s5229_s1 + $0x50] sm:$0xff] }
   0x5   :  { %4352 = vmatpush3.bf16.msra.mxu1 %v4351_v8  ;;  %4347 = vmatprep.subr.bf16.mxu0 %v4550_v3  ;;  %v42_v17 = vld [vmem:[%s5229_s1 + $0x68] sm:$0xff]  ;;  %v4643_v18 = vld [vmem:[%s5228_s0] sm:$0xff]  ;;  %v4357_v19 = vpack.c.bf16 %v38_v15, %v37_v14  ;;  %v40_v23 = vld [vmem:[%s5229_s1 + $0x58] sm:$0xff] }
   0x6   :  { %4353 = vmatprep.subr.bf16.mxu1 %v4550_v3  ;;  %v4648_v20 = vld [vmem:[%s5228_s0 + $0x8] sm:$0xff]  ;;  %v4363_v21 = vpack.c.bf16 %v42_v17, %v41_v16  ;;  %v43_v24 = vld [vmem:[%s5229_s1 + $0x70] sm:$0xff]  ;;  %v44_v25 = vld [vmem:[%s5229_s1 + $0x78] sm:$0xff]  ;;  %v4360_v26 = vpack.c.bf16 %v40_v23, %v39_v22 }
   0x7   :  { %v4366_v27 = vpack.c.bf16 %v44_v25, %v43_v24  ;;  %v45_v28 = vld [vmem:[%s5229_s1 + $0x80] sm:$0xff]  ;;  %v46_v29 = vld [vmem:[%s5229_s1 + $0x88] sm:$0xff]  ;;  %v47_v34 = vld [vmem:[%s5229_s1 + $0x90] sm:$0xff] }
   0x8   :  { %4349 = vmatpush3.bf16.msra.mxu0 %v4348_v12  ;;  %v49_v30 = vld [vmem:[%s5229_s1 + $0xa0] sm:$0xff]  ;;  %v50_v31 = vld [vmem:[%s5229_s1 + $0xa8] sm:$0xff]  ;;  %v4369_v32 = vpack.c.bf16 %v46_v29, %v45_v28  ;;  %v48_v35 = vld [vmem:[%s5229_s1 + $0x98] sm:$0xff] }
   0x9   :  { %4355 = vmatpush3.bf16.msra.mxu1 %v4354_v13  ;;  %4356 = vmatprep.subr.bf16.mxu0 %v4550_v3  ;;  %v4375_v33 = vpack.c.bf16 %v50_v31, %v49_v30  ;;  %v51_v36 = vld [vmem:[%s5229_s1 + $0xb0] sm:$0xff]  ;;  %v52_v37 = vld [vmem:[%s5229_s1 + $0xb8] sm:$0xff]  ;;  %v4372_v38 = vpack.c.bf16 %v48_v35, %v47_v34  ;;  %v53_v40 = vld [vmem:[%s5229_s1 + $0xc0] sm:$0xff] }
   0xa   :  { %4362 = vmatprep.subr.bf16.mxu1 %v4550_v3  ;;  %v4378_v39 = vpack.c.bf16 %v52_v37, %v51_v36  ;;  %v54_v41 = vld [vmem:[%s5229_s1 + $0xc8] sm:$0xff]  ;;  %v57_v42 = vld [vmem:[%s5229_s1 + $0xe0] sm:$0xff] }
   0xb   :  { %3969 = vmatmul.mubr.msk.f32.vlgmr.msra.gmra.mrb[0].mxu0 %vm61_vm1, %v4643_v18  ;;  %v58_v43 = vld [vmem:[%s5229_s1 + $0xe8] sm:$0xff]  ;;  %v4381_v44 = vpack.c.bf16 %v54_v41, %v53_v40 }
   0xc   :  { %3980 = vmatmul.mubr.msk.f32.vlgmr.msra.gmra.mrb[0].mxu1 %vm61_vm1, %v4648_v20  ;;  %4358 = vmatpush3.bf16.msra.mxu0 %v4357_v19 }
   0xd   :  { %4364 = vmatpush3.bf16.msra.mxu1 %v4363_v21  ;;  %4359 = vmatprep.subr.bf16.mxu0 %v4550_v3 }
   0xe   :  { %4365 = vmatprep.subr.bf16.mxu1 %v4550_v3  ;;  %3990 = vmatprep.mubr.msk.f32.mxu0 %vm4551_vm0, %v4552_v11 }
   0xf   :  { %4001 = vmatprep.mubr.msk.f32.mxu1 %vm4551_vm0, %v4552_v11 }
  0x10   :  { %4361 = vmatpush3.bf16.msra.mxu0 %v4360_v26 }
  0x11   :  { %4367 = vmatpush3.bf16.msra.mxu1 %v4366_v27  ;;  %4368 = vmatprep.subr.bf16.mxu0 %v4550_v3 }
  0x12   :  { %4374 = vmatprep.subr.bf16.mxu1 %v4550_v3 }
  0x13   :  { %3991 = vmatmul.mubr.msk.f32.vlgmr.msra.gmra.mrb[2].mxu0 %vm61_vm1, %v4643_v18 }
  0x14   :  { %4002 = vmatmul.mubr.msk.f32.vlgmr.msra.gmra.mrb[2].mxu1 %vm61_vm1, %v4648_v20  ;;  %4370 = vmatpush3.bf16.msra.mxu0 %v4369_v32 }
  0x15   :  { %4376 = vmatpush3.bf16.msra.mxu1 %v4375_v33  ;;  %4371 = vmatprep.subr.bf16.mxu0 %v4550_v3 }
  0x16   :  { %4377 = vmatprep.subr.bf16.mxu1 %v4550_v3  ;;  %4012 = vmatprep.mubr.msk.f32.mxu0 %vm4551_vm0, %v4552_v11 }
  0x17   :  { %4023 = vmatprep.mubr.msk.f32.mxu1 %vm4551_vm0, %v4552_v11 }
  0x18   :  { %4373 = vmatpush3.bf16.msra.mxu0 %v4372_v38 }
  0x19   :  { %12 = vsyncpa [#allocation3], 0  ;;  %4379 = vmatpush3.bf16.msra.mxu1 %v4378_v39  ;;  %4380 = vmatprep.subr.bf16.mxu0 %v4550_v3  ;;  %v4387_v45 = vpack.c.bf16 %v58_v43, %v57_v42  ;;  %v55_v46 = vld [vmem:[%s5229_s1 + $0xd0] sm:$0xff]  ;;  %v56_v47 = vld [vmem:[%s5229_s1 + $0xd8] sm:$0xff]  ;;  %vm1813_vm2 = vcmask 64512   ;;  %s4553_s13 = smov [#allocation2]  }
  0x1a   :  { %4386 = vmatprep.subr.bf16.mxu1 %v4550_v3  ;;  %v59_v48 = vld [vmem:[%s5229_s1 + $0xf0] sm:$0xff]  ;;  %v60_v49 = vld [vmem:[%s5229_s1 + $0xf8] sm:$0xff]  ;;  %v4384_v50 = vpack.c.bf16 %v56_v47, %v55_v46  ;;  %v628_v52 = vld [vmem:[%s5230_s2] sm:$0xff] }
  0x1b   :  { %4013 = vmatmul.mubr.msk.f32.vlgmr.msra.gmra.mrb[4].mxu0 %vm61_vm1, %v4643_v18  ;;  %v4390_v51 = vpack.c.bf16 %v60_v49, %v59_v48  ;;  %v629_v53 = vld [vmem:[%s5230_s2 + $0x8] sm:$0xff]  ;;  %v632_v54 = vld [vmem:[%s5230_s2 + $0x20] sm:$0xff]  ;;  %v630_v58 = vld [vmem:[%s5230_s2 + $0x10] sm:$0xff] }
  0x1c   :  { %4024 = vmatmul.mubr.msk.f32.vlgmr.msra.gmra.mrb[4].mxu1 %vm61_vm1, %v4648_v20  ;;  %4382 = vmatpush3.bf16.msra.mxu0 %v4381_v44  ;;  %v633_v55 = vld [vmem:[%s5230_s2 + $0x28] sm:$0xff]  ;;  %v4393_v56 = vpack.c.bf16 %v629_v53, %v628_v52  ;;  %v631_v59 = vld [vmem:[%s5230_s2 + $0x18] sm:$0xff]  ;;  %v634_v60 = vld [vmem:[%s5230_s2 + $0x30] sm:$0xff] }
  0x1d   :  { %4388 = vmatpush3.bf16.msra.mxu1 %v4387_v45  ;;  %4383 = vmatprep.subr.bf16.mxu0 %v4550_v3  ;;  %v4399_v57 = vpack.c.bf16 %v633_v55, %v632_v54  ;;  %v635_v61 = vld [vmem:[%s5230_s2 + $0x38] sm:$0xff]  ;;  %v4396_v62 = vpack.c.bf16 %v631_v59, %v630_v58  ;;  %v636_v0 = vld [vmem:[%s5230_s2 + $0x40] sm:$0xff]  ;;  %v637_v1 = vld [vmem:[%s5230_s2 + $0x48] sm:$0xff] }
  0x1e   :  { %4389 = vmatprep.subr.bf16.mxu1 %v4550_v3  ;;  %4034 = vmatprep.mubr.msk.f32.mxu0 %vm4551_vm0, %v4552_v11  ;;  %v4402_v63 = vpack.c.bf16 %v635_v61, %v634_v60  ;;  %v640_v2 = vld [vmem:[%s5230_s2 + $0x60] sm:$0xff]  ;;  %v641_v4 = vld [vmem:[%s5230_s2 + $0x68] sm:$0xff]  ;;  %v4405_v5 = vpack.c.bf16 %v637_v1, %v636_v0  ;;  %v638_v7 = vld [vmem:[%s5230_s2 + $0x50] sm:$0xff] }
  0x1f   :  { %4045 = vmatprep.mubr.msk.f32.mxu1 %vm4551_vm0, %v4552_v11  ;;  %v4411_v6 = vpack.c.bf16 %v641_v4, %v640_v2  ;;  %v639_v8 = vld [vmem:[%s5230_s2 + $0x58] sm:$0xff]  ;;  %v642_v9 = vld [vmem:[%s5230_s2 + $0x70] sm:$0xff]  ;;  %v644_v14 = vld [vmem:[%s5230_s2 + $0x80] sm:$0xff] }
  0x20   :  { %4385 = vmatpush3.bf16.msra.mxu0 %v4384_v50  ;;  %v643_v10 = vld [vmem:[%s5230_s2 + $0x78] sm:$0xff]  ;;  %v4408_v12 = vpack.c.bf16 %v639_v8, %v638_v7  ;;  %v645_v15 = vld [vmem:[%s5230_s2 + $0x88] sm:$0xff]  ;;  %v648_v16 = vld [vmem:[%s5230_s2 + $0xa0] sm:$0xff] }
  0x21   :  { %4391 = vmatpush3.bf16.msra.mxu1 %v4390_v51  ;;  %4392 = vmatprep.subr.bf16.mxu0 %v4550_v3  ;;  %v4414_v13 = vpack.c.bf16 %v643_v10, %v642_v9  ;;  %v649_v17 = vld [vmem:[%s5230_s2 + $0xa8] sm:$0xff]  ;;  %v4417_v19 = vpack.c.bf16 %v645_v15, %v644_v14  ;;  %v646_v22 = vld [vmem:[%s5230_s2 + $0x90] sm:$0xff]  ;;  %v647_v23 = vld [vmem:[%s5230_s2 + $0x98] sm:$0xff] }
  0x22   :  { %4398 = vmatprep.subr.bf16.mxu1 %v4550_v3  ;;  %v4423_v21 = vpack.c.bf16 %v649_v17, %v648_v16  ;;  %v650_v24 = vld [vmem:[%s5230_s2 + $0xb0] sm:$0xff]  ;;  %v651_v25 = vld [vmem:[%s5230_s2 + $0xb8] sm:$0xff]  ;;  %v4420_v26 = vpack.c.bf16 %v647_v23, %v646_v22  ;;  %v652_v28 = vld [vmem:[%s5230_s2 + $0xc0] sm:$0xff] }
  0x23   :  { %4035 = vmatmul.mubr.msk.f32.vlgmr.msra.gmra.mrb[6].mxu0 %vm61_vm1, %v4643_v18  ;;  %v4426_v27 = vpack.c.bf16 %v651_v25, %v650_v24  ;;  %v653_v29 = vld [vmem:[%s5230_s2 + $0xc8] sm:$0xff]  ;;  %v656_v30 = vld [vmem:[%s5230_s2 + $0xe0] sm:$0xff]  ;;  %v654_v34 = vld [vmem:[%s5230_s2 + $0xd0] sm:$0xff] }
  0x24   :  { %4046 = vmatmul.mubr.msk.f32.vlgmr.msra.gmra.mrb[6].mxu1 %vm61_vm1, %v4648_v20  ;;  %4394 = vmatpush3.bf16.msra.mxu0 %v4393_v56  ;;  %v657_v31 = vld [vmem:[%s5230_s2 + $0xe8] sm:$0xff]  ;;  %v4429_v32 = vpack.c.bf16 %v653_v29, %v652_v28  ;;  %v655_v35 = vld [vmem:[%s5230_s2 + $0xd8] sm:$0xff]  ;;  %v658_v36 = vld [vmem:[%s5230_s2 + $0xf0] sm:$0xff] }
  0x25   :  { %4400 = vmatpush3.bf16.msra.mxu1 %v4399_v57  ;;  %4395 = vmatprep.subr.bf16.mxu0 %v4550_v3  ;;  %v4435_v33 = vpack.c.bf16 %v657_v31, %v656_v30  ;;  %v659_v37 = vld [vmem:[%s5230_s2 + $0xf8] sm:$0xff]  ;;  %v4432_v38 = vpack.c.bf16 %v655_v35, %v654_v34  ;;  %v1220_v40 = vld [vmem:[%s5231_s3] sm:$0xff]  ;;  %v1221_v41 = vld [vmem:[%s5231_s3 + $0x8] sm:$0xff]  ;;  %s3724_s2 = sshll.u32 %s4553_s13, 4  ;;  %s3725_s2 = int_to_ptr.vmem [resolvable:$true] %s3724_s2 }
  0x26   :  { %4401 = vmatprep.subr.bf16.mxu1 %v4550_v3  ;;  %4056 = vmatprep.mubr.msk.f32.mxu0 %vm4551_vm0, %v4552_v11  ;;  %v4438_v39 = vpack.c.bf16 %v659_v37, %v658_v36  ;;  %v1224_v42 = vld [vmem:[%s5231_s3 + $0x20] sm:$0xff]  ;;  %v1225_v43 = vld [vmem:[%s5231_s3 + $0x28] sm:$0xff]  ;;  %v4441_v44 = vpack.c.bf16 %v1221_v41, %v1220_v40  ;;  %v1222_v46 = vld [vmem:[%s5231_s3 + $0x10] sm:$0xff]  ;;  %s4526_s14 = scalar_lea.vmem %s3725_s2, 256  ;;  %p4531_p1 = scmp.lt.s32.totalorder %s3725_s2, %s3725_s2 }
  0x27   :  { %4067 = vmatprep.mubr.msk.f32.mxu1 %vm4551_vm0, %v4552_v11  ;;  %v4447_v45 = vpack.c.bf16 %v1225_v43, %v1224_v42  ;;  %v1223_v47 = vld [vmem:[%s5231_s3 + $0x18] sm:$0xff]  ;;  %v1226_v48 = vld [vmem:[%s5231_s3 + $0x30] sm:$0xff]  ;;  %v1228_v52 = vld [vmem:[%s5231_s3 + $0x40] sm:$0xff]  ;;  %p4527_p0 = scmp.ne.s32.totalorder %s3725_s2, %s4526_s14  ;;  %p4532_p2 = scmp.lt.s32.totalorder %s4526_s14, %s4526_s14 }
  0x28   :  { %4397 = vmatpush3.bf16.msra.mxu0 %v4396_v62  ;;  %v4444_v49 = vpack.c.bf16 %v1223_v47, %v1222_v46  ;;  %v1227_v50 = vld [vmem:[%s5231_s3 + $0x38] sm:$0xff]  ;;  %v1229_v53 = vld [vmem:[%s5231_s3 + $0x48] sm:$0xff]  ;;  %v1232_v54 = vld [vmem:[%s5231_s3 + $0x60] sm:$0xff] }
  0x29   :  { %4403 = vmatpush3.bf16.msra.mxu1 %v4402_v63  ;;  %4404 = vmatprep.subr.bf16.mxu0 %v4550_v3  ;;  %v4450_v51 = vpack.c.bf16 %v1227_v50, %v1226_v48  ;;  %v4453_v55 = vpack.c.bf16 %v1229_v53, %v1228_v52  ;;  %v1233_v56 = vld [vmem:[%s5231_s3 + $0x68] sm:$0xff]  ;;  %v1230_v58 = vld [vmem:[%s5231_s3 + $0x50] sm:$0xff]  ;;  %v1231_v59 = vld [vmem:[%s5231_s3 + $0x58] sm:$0xff]  ;;  %p4533_p3 = por %p4532_p2, %p4531_p1 }
  0x2a   :  { %4410 = vmatprep.subr.bf16.mxu1 %v4550_v3  ;;  %v4459_v57 = vpack.c.bf16 %v1233_v56, %v1232_v54  ;;  %v1234_v60 = vld [vmem:[%s5231_s3 + $0x70] sm:$0xff]  ;;  %v4456_v61 = vpack.c.bf16 %v1231_v59, %v1230_v58  ;;  %v1235_v62 = vld [vmem:[%s5231_s3 + $0x78] sm:$0xff]  ;;  %v1236_v0 = vld [vmem:[%s5231_s3 + $0x80] sm:$0xff] }
  0x2b   :  { %4057 = vmatmul.mubr.msk.f32.vlgmr.msra.gmra.mrb[8].mxu0 %vm61_vm1, %v4643_v18  ;;  %v4462_v63 = vpack.c.bf16 %v1235_v62, %v1234_v60  ;;  %v1237_v1 = vld [vmem:[%s5231_s3 + $0x88] sm:$0xff]  ;;  %v1240_v2 = vld [vmem:[%s5231_s3 + $0xa0] sm:$0xff]  ;;  %v1238_v7 = vld [vmem:[%s5231_s3 + $0x90] sm:$0xff]  ;;  %p4534_p4 = pnand %p4533_p3, %p4527_p0 }
  0x2c   :  { %4068 = vmatmul.mubr.msk.f32.vlgmr.msra.gmra.mrb[8].mxu1 %vm61_vm1, %v4648_v20  ;;  %4406 = vmatpush3.bf16.msra.mxu0 %v4405_v5  ;;  %v4465_v4 = vpack.c.bf16 %v1237_v1, %v1236_v0  ;;  %v1241_v5 = vld [vmem:[%s5231_s3 + $0xa8] sm:$0xff]  ;;  %v1239_v8 = vld [vmem:[%s5231_s3 + $0x98] sm:$0xff]  ;;  %v1242_v9 = vld [vmem:[%s5231_s3 + $0xb0] sm:$0xff] }
  0x2d   :  { %4412 = vmatpush3.bf16.msra.mxu1 %v4411_v6  ;;  %4407 = vmatprep.subr.bf16.mxu0 %v4550_v3  ;;  %v4471_v6 = vpack.c.bf16 %v1241_v5, %v1240_v2  ;;  %v4468_v10 = vpack.c.bf16 %v1239_v8, %v1238_v7  ;;  %v1244_v14 = vld [vmem:[%s5231_s3 + $0xc0] sm:$0xff]  ;;  %v1245_v15 = vld [vmem:[%s5231_s3 + $0xc8] sm:$0xff]  ;;  %v1246_v22 = vld [vmem:[%s5231_s3 + $0xd0] sm:$0xff] }
  0x2e   :  { %4413 = vmatprep.subr.bf16.mxu1 %v4550_v3  ;;  %4078 = vmatprep.mubr.msk.f32.mxu0 %vm4551_vm0, %v4552_v11  ;;  %v1248_v16 = vld [vmem:[%s5231_s3 + $0xe0] sm:$0xff]  ;;  %v4477_v17 = vpack.c.bf16 %v1245_v15, %v1244_v14  ;;  %v1247_v23 = vld [vmem:[%s5231_s3 + $0xd8] sm:$0xff]  ;;  %v1250_v24 = vld [vmem:[%s5231_s3 + $0xf0] sm:$0xff] }
  0x2f   :  { %4089 = vmatprep.mubr.msk.f32.mxu1 %vm4551_vm0, %v4552_v11  ;;  %v4480_v25 = vpack.c.bf16 %v1247_v23, %v1246_v22 }
  0x30   :  { %4409 = vmatpush3.bf16.msra.mxu0 %v4408_v12  ;;  %v1243_v12 = vld [vmem:[%s5231_s3 + $0xb8] sm:$0xff] }
  0x31   :  { %4415 = vmatpush3.bf16.msra.mxu1 %v4414_v13  ;;  %4416 = vmatprep.subr.bf16.mxu0 %v4550_v3  ;;  %v4474_v13 = vpack.c.bf16 %v1243_v12, %v1242_v9 }
  0x32   :  { %4422 = vmatprep.subr.bf16.mxu1 %v4550_v3 }
  0x33   :  { %4079 = vmatmul.mubr.msk.f32.vlgmr.msra.gmra.mrb[10].mxu0 %vm61_vm1, %v4643_v18 }
  0x34   :  { %4090 = vmatmul.mubr.msk.f32.vlgmr.msra.gmra.mrb[10].mxu1 %vm61_vm1, %v4648_v20  ;;  %4418 = vmatpush3.bf16.msra.mxu0 %v4417_v19  ;;  %v1249_v19 = vld [vmem:[%s5231_s3 + $0xe8] sm:$0xff] }
  0x35   :  { %4424 = vmatpush3.bf16.msra.mxu1 %v4423_v21  ;;  %4419 = vmatprep.subr.bf16.mxu0 %v4550_v3  ;;  %v4483_v21 = vpack.c.bf16 %v1249_v19, %v1248_v16 }
  0x36   :  { %4425 = vmatprep.subr.bf16.mxu1 %v4550_v3  ;;  %4100 = vmatprep.mubr.msk.f32.mxu0 %vm4551_vm0, %v4552_v11 }
  0x37   :  { %4111 = vmatprep.mubr.msk.f32.mxu1 %vm4551_vm0, %v4552_v11 }
  0x38   :  { %4421 = vmatpush3.bf16.msra.mxu0 %v4420_v26  ;;  %v1251_v26 = vld [vmem:[%s5231_s3 + $0xf8] sm:$0xff] }
  0x39   :  { %4427 = vmatpush3.bf16.msra.mxu1 %v4426_v27  ;;  %4428 = vmatprep.subr.bf16.mxu0 %v4550_v3  ;;  %v4486_v27 = vpack.c.bf16 %v1251_v26, %v1250_v24 }
  0x3a   :  { %4434 = vmatprep.subr.bf16.mxu1 %v4550_v3 }
  0x3b   :  { %4101 = vmatmul.mubr.msk.f32.vlgmr.msra.gmra.mrb[12].mxu0 %vm61_vm1, %v4643_v18 }
  0x3c   :  { %4112 = vmatmul.mubr.msk.f32.vlgmr.msra.gmra.mrb[12].mxu1 %vm61_vm1, %v4648_v20  ;;  %4430 = vmatpush3.bf16.msra.mxu0 %v4429_v32 }
  0x3d   :  { %4436 = vmatpush3.bf16.msra.mxu1 %v4435_v33  ;;  %4431 = vmatprep.subr.bf16.mxu0 %v4550_v3 }
  0x3e   :  { %4437 = vmatprep.subr.bf16.mxu1 %v4550_v3  ;;  %4122 = vmatprep.mubr.msk.f32.mxu0 %vm4551_vm0, %v4552_v11 }
  0x3f   :  { %4133 = vmatprep.mubr.msk.f32.mxu1 %vm4551_vm0, %v4552_v11 }
  0x40   :  { %4433 = vmatpush3.bf16.msra.mxu0 %v4432_v38 }
  0x41   :  { %4439 = vmatpush3.bf16.msra.mxu1 %v4438_v39  ;;  %4440 = vmatprep.subr.bf16.mxu0 %v4550_v3 }
  0x42   :  { %4446 = vmatprep.subr.bf16.mxu1 %v4550_v3 }
  0x43   :  { %4123 = vmatmul.mubr.msk.f32.vlgmr.msra.gmra.mrb[14].mxu0 %vm61_vm1, %v4643_v18 }
  0x44   :  { %4134 = vmatmul.mubr.msk.f32.vlgmr.msra.gmra.mrb[14].mxu1 %vm61_vm1, %v4648_v20  ;;  %4442 = vmatpush3.bf16.msra.mxu0 %v4441_v44 }
  0x45   :  { %4448 = vmatpush3.bf16.msra.mxu1 %v4447_v45  ;;  %4443 = vmatprep.subr.bf16.mxu0 %v4550_v3 }
  0x46   :  { %4449 = vmatprep.subr.bf16.mxu1 %v4550_v3  ;;  %4144 = vmatprep.mubr.msk.f32.mxu0 %vm4551_vm0, %v4552_v11 }
  0x47   :  { %4155 = vmatprep.mubr.msk.f32.mxu1 %vm4551_vm0, %v4552_v11 }
  0x48   :  { %4445 = vmatpush3.bf16.msra.mxu0 %v4444_v49 }
  0x49   :  { %4451 = vmatpush3.bf16.msra.mxu1 %v4450_v51  ;;  %4452 = vmatprep.subr.bf16.mxu0 %v4550_v3 }
  0x4a   :  { %4458 = vmatprep.subr.bf16.mxu1 %v4550_v3 }
  0x4b   :  { %4145 = vmatmul.mubr.msk.f32.vlgmr.msra.gmra.mrb[16].mxu0 %vm61_vm1, %v4643_v18 }
  0x4c   :  { %4156 = vmatmul.mubr.msk.f32.vlgmr.msra.gmra.mrb[16].mxu1 %vm61_vm1, %v4648_v20  ;;  %4454 = vmatpush3.bf16.msra.mxu0 %v4453_v55 }
  0x4d   :  { %4460 = vmatpush3.bf16.msra.mxu1 %v4459_v57  ;;  %4455 = vmatprep.subr.bf16.mxu0 %v4550_v3 }
  0x4e   :  { %4461 = vmatprep.subr.bf16.mxu1 %v4550_v3  ;;  %4166 = vmatprep.mubr.msk.f32.mxu0 %vm4551_vm0, %v4552_v11 }
  0x4f   :  { %4177 = vmatprep.mubr.msk.f32.mxu1 %vm4551_vm0, %v4552_v11 }
  0x50   :  { %4457 = vmatpush3.bf16.msra.mxu0 %v4456_v61 }
  0x51   :  { %4463 = vmatpush3.bf16.msra.mxu1 %v4462_v63  ;;  %4464 = vmatprep.subr.bf16.mxu0 %v4550_v3 }
  0x52   :  { %4470 = vmatprep.subr.bf16.mxu1 %v4550_v3 }
  0x53   :  { %4167 = vmatmul.mubr.msk.f32.vlgmr.msra.gmra.mrb[18].mxu0 %vm61_vm1, %v4643_v18 }
  0x54   :  { %4178 = vmatmul.mubr.msk.f32.vlgmr.msra.gmra.mrb[18].mxu1 %vm61_vm1, %v4648_v20  ;;  %4466 = vmatpush3.bf16.msra.mxu0 %v4465_v4 }
  0x55   :  { %4472 = vmatpush3.bf16.msra.mxu1 %v4471_v6  ;;  %4467 = vmatprep.subr.bf16.mxu0 %v4550_v3 }
  0x56   :  { %4473 = vmatprep.subr.bf16.mxu1 %v4550_v3  ;;  %4188 = vmatprep.mubr.msk.f32.mxu0 %vm4551_vm0, %v4552_v11 }
  0x57   :  { %4199 = vmatprep.mubr.msk.f32.mxu1 %vm4551_vm0, %v4552_v11 }
  0x58   :  { %4469 = vmatpush3.bf16.msra.mxu0 %v4468_v10  ;;  %v1812_v10 = vld [vmem:[%s5234_s6] sm:$0xff] }
  0x59   :  { %4475 = vmatpush3.bf16.msra.mxu1 %v4474_v13  ;;  %4476 = vmatprep.subr.bf16.mxu0 %v4550_v3 }
  0x5a   :  { %4482 = vmatprep.subr.bf16.mxu1 %v4550_v3 }
  0x5b   :  { %4189 = vmatmul.mubr.msk.f32.vlgmr.msra.gmra.mrb[20].mxu0 %vm61_vm1, %v4643_v18 }
  0x5c   :  { %4200 = vmatmul.mubr.msk.f32.vlgmr.msra.gmra.mrb[20].mxu1 %vm61_vm1, %v4648_v20  ;;  %4478 = vmatpush3.bf16.msra.mxu0 %v4477_v17 }
  0x5d   :  { %4484 = vmatpush3.bf16.msra.mxu1 %v4483_v21  ;;  %4479 = vmatprep.subr.bf16.mxu0 %v4550_v3 }
  0x5e   :  { %4485 = vmatprep.subr.bf16.mxu1 %v4550_v3  ;;  %4210 = vmatprep.mubr.msk.f32.mxu0 %vm4551_vm0, %v4552_v11 }
  0x5f   :  { %4221 = vmatprep.mubr.msk.f32.mxu1 %vm4551_vm0, %v4552_v11 }
  0x60   :  { %4481 = vmatpush3.bf16.msra.mxu0 %v4480_v25 }
  0x61   :  { %4487 = vmatpush3.bf16.msra.mxu1 %v4486_v27  ;;  %4224 = vmatprep.subr.mxu0 %v4552_v11 }
  0x62   :  { %4229 = vmatprep.subr.mxu1 %v4552_v11 }
  0x63   :  { %4211 = vmatmul.mubr.msk.f32.vlgmr.msra.gmra.mrb[22].mxu0 %vm61_vm1, %v4643_v18 }
  0x64   :  { %4222 = vmatmul.mubr.msk.f32.vlgmr.msra.gmra.mrb[22].mxu1 %vm61_vm1, %v4648_v20  ;;  %4226 = vmatprep.mubr.msk.f32.mxu0 %vm4551_vm0, %v4552_v11 }
  0x65   :  { %4231 = vmatprep.mubr.msk.f32.mxu1 %vm4551_vm0, %v4552_v11 }
  0xde   :  { %v131_v3 = vpop.f32.mrb[0].mxu0 }
  0xdf   :  { %v204_v28 = vpop.f32.mrb[0].mxu1  ;;  %v3970_v29 = vpop.f32.mrb[1].mxu0 }
  0xe0   :  { %v3981_v30 = vpop.f32.mrb[1].mxu1 }
  0xe6   :  { %v274_v31 = vpop.f32.mrb[2].mxu0 }
  0xe7   :  { %v344_v32 = vpop.f32.mrb[2].mxu1  ;;  %v3992_v33 = vpop.f32.mrb[3].mxu0 }
  0xe8   :  { %v4003_v34 = vpop.f32.mrb[3].mxu1 }
  0xee   :  { %v414_v35 = vpop.f32.mrb[4].mxu0 }
  0xef   :  { %v484_v36 = vpop.f32.mrb[4].mxu1  ;;  %v4014_v18 = vpop.f32.mrb[5].mxu0 }
  0xf0   :  { %v4025_v37 = vpop.f32.mrb[5].mxu1 }
  0xf6   :  { %v554_v38 = vpop.f32.mrb[6].mxu0 }
  0xf7   :  { %v624_v20 = vpop.f32.mrb[6].mxu1  ;;  %v4036_v39 = vpop.f32.mrb[7].mxu0 }
  0xf8   :  { %v4047_v40 = vpop.f32.mrb[7].mxu1 }
  0xfe   :  { %v726_v41 = vpop.f32.mrb[8].mxu0 }
  0xff   :  { %v796_v42 = vpop.f32.mrb[8].mxu1  ;;  %v4058_v43 = vpop.f32.mrb[9].mxu0  ;;  %4225 = vmatpush3.xpose.msk.msra.mxu0 %vm1813_vm2, %v726_v41 }
 0x100   :  { %v4069_v44 = vpop.f32.mrb[9].mxu1  ;;  %4230 = vmatpush3.xpose.msk.msra.mxu1 %vm1813_vm2, %v796_v42  ;;  %4234 = vmatprep.subr.mxu0 %v4552_v11 }
 0x101   :  { %4239 = vmatprep.subr.mxu1 %v4552_v11 }
 0x102   :  { %4227 = vmatmul.mubr.msk.f32.vlgmr.msra.gmra.mrb[24].mxu0 %vm1813_vm2, %v131_v3 }
 0x103   :  { %4232 = vmatmul.mubr.msk.f32.vlgmr.msra.gmra.mrb[24].mxu1 %vm1813_vm2, %v204_v28  ;;  %4236 = vmatprep.mubr.msk.f32.mxu0 %vm4551_vm0, %v4552_v11 }
 0x104   :  { %4241 = vmatprep.mubr.msk.f32.mxu1 %vm4551_vm0, %v4552_v11 }
 0x106   :  { %v866_v45 = vpop.f32.mrb[10].mxu0 }
 0x107   :  { %v936_v46 = vpop.f32.mrb[10].mxu1  ;;  %v4080_v47 = vpop.f32.mrb[11].mxu0  ;;  %4235 = vmatpush3.xpose.msk.msra.mxu0 %vm1813_vm2, %v866_v45 }
 0x108   :  { %v4091_v48 = vpop.f32.mrb[11].mxu1  ;;  %4240 = vmatpush3.xpose.msk.msra.mxu1 %vm1813_vm2, %v936_v46  ;;  %4244 = vmatprep.subr.mxu0 %v4552_v11 }
 0x109   :  { %4249 = vmatprep.subr.mxu1 %v4552_v11 }
 0x10a   :  { %4237 = vmatmul.mubr.msk.f32.vlgmr.msra.gmra.mrb[26].mxu0 %vm1813_vm2, %v274_v31 }
 0x10b   :  { %4242 = vmatmul.mubr.msk.f32.vlgmr.msra.gmra.mrb[26].mxu1 %vm1813_vm2, %v344_v32  ;;  %4246 = vmatprep.mubr.msk.f32.mxu0 %vm4551_vm0, %v4552_v11 }
 0x10c   :  { %4251 = vmatprep.mubr.msk.f32.mxu1 %vm4551_vm0, %v4552_v11 }
 0x10e   :  { %v1006_v49 = vpop.f32.mrb[12].mxu0 }
 0x10f   :  { %v1076_v50 = vpop.f32.mrb[12].mxu1  ;;  %v4102_v51 = vpop.f32.mrb[13].mxu0  ;;  %4245 = vmatpush3.xpose.msk.msra.mxu0 %vm1813_vm2, %v1006_v49 }
 0x110   :  { %v4113_v52 = vpop.f32.mrb[13].mxu1  ;;  %4250 = vmatpush3.xpose.msk.msra.mxu1 %vm1813_vm2, %v1076_v50  ;;  %4254 = vmatprep.subr.mxu0 %v4552_v11 }
 0x111   :  { %4259 = vmatprep.subr.mxu1 %v4552_v11 }
 0x112   :  { %4247 = vmatmul.mubr.msk.f32.vlgmr.msra.gmra.mrb[28].mxu0 %vm1813_vm2, %v414_v35 }
 0x113   :  { %4252 = vmatmul.mubr.msk.f32.vlgmr.msra.gmra.mrb[28].mxu1 %vm1813_vm2, %v484_v36  ;;  %4256 = vmatprep.mubr.msk.f32.mxu0 %vm4551_vm0, %v4552_v11 }
 0x114   :  { %4261 = vmatprep.mubr.msk.f32.mxu1 %vm4551_vm0, %v4552_v11 }
 0x116   :  { %v1146_v53 = vpop.f32.mrb[14].mxu0 }
 0x117   :  { %v1216_v54 = vpop.f32.mrb[14].mxu1  ;;  %v4124_v55 = vpop.f32.mrb[15].mxu0  ;;  %4255 = vmatpush3.xpose.msk.msra.mxu0 %vm1813_vm2, %v1146_v53 }
 0x118   :  { %v4135_v56 = vpop.f32.mrb[15].mxu1  ;;  %4260 = vmatpush3.xpose.msk.msra.mxu1 %vm1813_vm2, %v1216_v54  ;;  %4264 = vmatprep.subr.mxu0 %v4552_v11 }
 0x119   :  { %4269 = vmatprep.subr.mxu1 %v4552_v11 }
 0x11a   :  { %4257 = vmatmul.mubr.msk.f32.vlgmr.msra.gmra.mrb[30].mxu0 %vm1813_vm2, %v554_v38 }
 0x11b   :  { %4262 = vmatmul.mubr.msk.f32.vlgmr.msra.gmra.mrb[30].mxu1 %vm1813_vm2, %v624_v20  ;;  %4266 = vmatprep.mubr.msk.f32.mxu0 %vm4551_vm0, %v4552_v11 }
 0x11c   :  { %4271 = vmatprep.mubr.msk.f32.mxu1 %vm4551_vm0, %v4552_v11 }
 0x11e   :  { %v1318_v57 = vpop.f32.mrb[16].mxu0 }
 0x11f   :  { %v4146_v58 = vpop.f32.mrb[17].mxu0  ;;  %4265 = vmatpush3.msra.mxu0 %v1318_v57  ;;  %v1388_v59 = vpop.f32.mrb[16].mxu1 }
 0x120   :  { %v4157_v60 = vpop.f32.mrb[17].mxu1  ;;  %4270 = vmatpush3.msra.mxu1 %v1388_v59  ;;  %4274 = vmatprep.subr.mxu0 %v4552_v11 }
 0x121   :  { %4279 = vmatprep.subr.mxu1 %v4552_v11 }
 0x126   :  { %v5086_v61 = vpop.f32.mrb[18].mxu0 }
 0x127   :  { %v4168_v62 = vpop.f32.mrb[19].mxu0  ;;  %v5088_v63 = vpop.f32.mrb[18].mxu1 }
 0x128   :  { %v4179_v0 = vpop.f32.mrb[19].mxu1 }
 0x12e   :  { %v5090_v1 = vpop.f32.mrb[20].mxu0 }
 0x12f   :  { %v4190_v2 = vpop.f32.mrb[21].mxu0  ;;  %v5092_v4 = vpop.f32.mrb[20].mxu1 }
 0x130   :  { %v4201_v5 = vpop.f32.mrb[21].mxu1 }
 0x136   :  { %v5094_v6 = vpop.f32.mrb[22].mxu0 }
 0x137   :  { %v5096_v7 = vpop.f32.mrb[22].mxu1  ;;  %v4212_v8 = vpop.f32.mrb[23].mxu0 }
 0x138   :  { %v4223_v9 = vpop.f32.mrb[23].mxu1 }
 0x1d5   :  { %v1886_v12 = vpop.f32.mrb[24].mxu0 }
 0x1d6   :  { %v1887_v13 = vadd.f32 %v1886_v12, %v1812_v10  ;;  %v1962_v14 = vpop.f32.mrb[24].mxu1  ;;  %v4228_v15 = vpop.f32.mrb[25].mxu0 }
 0x1d7   :  { %v1963_v16 = vadd.f32 %v1962_v14, %v1812_v10  ;;  %v4233_v17 = vpop.f32.mrb[25].mxu1 }
 0x1d8   :  { %v2422_v19 = vmax.f32 %v1887_v13, -3.4028235e+38 }
 0x1d9   :  { %v2423_v21 = vmax.f32 %v1963_v16, -3.4028235e+38 }
 0x1da   :  { %v2430_v22 = vsel %vm1813_vm2, %v2422_v19, -inf }
 0x1db   :  { %2431 = vmax.xlane.f32.xlu0 %v2430_v22  ;;  %v2433_v27 = vsel %vm1813_vm2, %v2423_v21, -inf }
 0x1dd   :  { %v2038_v23 = vpop.f32.mrb[26].mxu0 }
 0x1de   :  { %v2039_v24 = vadd.f32 %v2038_v23, %v1812_v10  ;;  %v2114_v25 = vpop.f32.mrb[26].mxu1  ;;  %v4238_v26 = vpop.f32.mrb[27].mxu0 }
 0x1df   :  { %v2115_v3 = vadd.f32 %v2114_v25, %v1812_v10  ;;  %v4243_v28 = vpop.f32.mrb[27].mxu1  ;;  %2434 = vmax.xlane.f32.xlu0 %v2433_v27 }
 0x1e0   :  { %v2424_v29 = vmax.f32 %v2039_v24, -3.4028235e+38 }
 0x1e1   :  { %v2425_v30 = vmax.f32 %v2115_v3, -3.4028235e+38 }
 0x1e2   :  { %v2436_v31 = vsel %vm1813_vm2, %v2424_v29, -inf }
 0x1e3   :  { %2437 = vmax.xlane.f32.xlu1 %v2436_v31  ;;  %v2439_v36 = vsel %vm1813_vm2, %v2425_v30, -inf }
 0x1e5   :  { %v2190_v32 = vpop.f32.mrb[28].mxu0 }
 0x1e6   :  { %v2191_v33 = vadd.f32 %v2190_v32, %v1812_v10  ;;  %v2266_v34 = vpop.f32.mrb[28].mxu1  ;;  %v4248_v35 = vpop.f32.mrb[29].mxu0 }
 0x1e7   :  { %v2267_v18 = vadd.f32 %v2266_v34, %v1812_v10  ;;  %v4253_v37 = vpop.f32.mrb[29].mxu1  ;;  %2440 = vmax.xlane.f32.xlu1 %v2439_v36 }
 0x1e8   :  { %v2426_v38 = vmax.f32 %v2191_v33, -3.4028235e+38 }
 0x1e9   :  { %v2427_v20 = vmax.f32 %v2267_v18, -3.4028235e+38 }
 0x1ea   :  { %v2442_v39 = vsel %vm1813_vm2, %v2426_v38, -inf }
 0x1eb   :  { %v2445_v40 = vsel %vm1813_vm2, %v2427_v20, -inf  ;;  %2443 = vmax.xlane.f32.xlu0 %v2442_v39 }
 0x1ec   :  { %2446 = vmax.xlane.f32.xlu1 %v2445_v40 }
 0x1ed   :  { %v2342_v41 = vpop.f32.mrb[30].mxu0 }
 0x1ee   :  { %v2343_v42 = vadd.f32 %v2342_v41, %v1812_v10  ;;  %v2418_v43 = vpop.f32.mrb[30].mxu1  ;;  %v4258_v44 = vpop.f32.mrb[31].mxu0 }
 0x1ef   :  { %v2419_v45 = vadd.f32 %v2418_v43, %v1812_v10  ;;  %v4263_v46 = vpop.f32.mrb[31].mxu1 }
 0x1f0   :  { %v2428_v47 = vmax.f32 %v2343_v42, -3.4028235e+38 }
 0x1f1   :  { %v2429_v48 = vmax.f32 %v2419_v45, -3.4028235e+38 }
 0x1f2   :  { %v2448_v49 = vsel %vm1813_vm2, %v2428_v47, -inf }
 0x1f3   :  { %v2451_v50 = vsel %vm1813_vm2, %v2429_v48, -inf  ;;  %2449 = vmax.xlane.f32.xlu0 %v2448_v49 }
 0x1f4   :  { %2452 = vmax.xlane.f32.xlu1 %v2451_v50 }
 0x268   :  { %v2432_v51 = vpop.xlane.xlu0 %2431 }
 0x269   :  { %v2454_v52 = vsub.f32 %v2422_v19, %v2432_v51 }
 0x26b   :  { %v2462_v53 = vmul.f32 1.442695, %v2454_v52 }
 0x26c   :  { %v2435_v54 = vpop.xlane.xlu0 %2434 }
 0x26d   :  { %4494 = vpow2.f32 %v2462_v53  ;;  %v2455_v55 = vsub.f32 %v2423_v21, %v2435_v54  ;;  %v3104_v54 = vld [vmem:[%s5232_s4 + $0x10] sm:$0xff] }
 0x26f   :  { %v2464_v56 = vmul.f32 1.442695, %v2455_v55 }
 0x270   :  { %v2438_v57 = vpop.xlane.xlu1 %2437 }
 0x271   :  { %4496 = vpow2.f32 %v2464_v56  ;;  %v2456_v58 = vsub.f32 %v2424_v29, %v2438_v57  ;;  %v3105_v57 = vld [vmem:[%s5232_s4 + $0x18] sm:$0xff] }
 0x273   :  { %v2466_v59 = vmul.f32 1.442695, %v2456_v58 }
 0x274   :  { %v2441_v60 = vpop.xlane.xlu1 %2440 }
 0x275   :  { %4498 = vpow2.f32 %v2466_v59  ;;  %v2457_v62 = vsub.f32 %v2425_v30, %v2441_v60  ;;  %v3106_v60 = vld [vmem:[%s5232_s4 + $0x20] sm:$0xff] }
 0x277   :  { %v4495_v0 = vpop.eup %4494  ;;  %v2468_v2 = vmul.f32 1.442695, %v2457_v62 }
 0x278   :  { %v2444_v5 = vpop.xlane.xlu0 %2443  ;;  %v2478_v8 = vsel %vm1813_vm2, %v4495_v0, 0.0 }
 0x279   :  { %4500 = vpow2.f32 %v2468_v2  ;;  %v2447_v9 = vpop.xlane.xlu1 %2446  ;;  %v2458_v10 = vsub.f32 %v2426_v38, %v2444_v5  ;;  %2479 = vadd.xlane.f32.xlu0 %v2478_v8  ;;  %v3107_v2 = vld [vmem:[%s5232_s4 + $0x28] sm:$0xff] }
 0x27a   :  { %v2459_v12 = vsub.f32 %v2427_v20, %v2447_v9  ;;  %v3108_v9 = vld [vmem:[%s5232_s4 + $0x30] sm:$0xff] }
 0x27b   :  { %v4497_v13 = vpop.eup %4496  ;;  %v2470_v14 = vmul.f32 1.442695, %v2458_v10 }
 0x27c   :  { %v2472_v15 = vmul.f32 1.442695, %v2459_v12  ;;  %v2481_v16 = vsel %vm1813_vm2, %v4497_v13, 0.0  ;;  %v3109_v12 = vld [vmem:[%s5232_s4 + $0x38] sm:$0xff] }
 0x27d   :  { %4502 = vpow2.f32 %v2470_v14  ;;  %2482 = vadd.xlane.f32.xlu1 %v2481_v16 }
 0x27e   :  { %4504 = vpow2.f32 %v2472_v15 }
 0x27f   :  { %v4499_v17 = vpop.eup %4498 }
 0x280   :  { %v2450_v19 = vpop.xlane.xlu0 %2449  ;;  %v2484_v21 = vsel %vm1813_vm2, %v4499_v17, 0.0 }
 0x281   :  { %v2453_v22 = vpop.xlane.xlu1 %2452  ;;  %v2460_v23 = vsub.f32 %v2428_v47, %v2450_v19  ;;  %2485 = vadd.xlane.f32.xlu0 %v2484_v21 }
 0x282   :  { %v2461_v24 = vsub.f32 %v2429_v48, %v2453_v22 }
 0x283   :  { %v4501_v25 = vpop.eup %4500  ;;  %v2474_v26 = vmul.f32 1.442695, %v2460_v23 }
 0x284   :  { %v2476_v27 = vmul.f32 1.442695, %v2461_v24  ;;  %v2487_v3 = vsel %vm1813_vm2, %v4501_v25, 0.0 }
 0x285   :  { %4506 = vpow2.f32 %v2474_v26  ;;  %2488 = vadd.xlane.f32.xlu1 %v2487_v3 }
 0x286   :  { %4508 = vpow2.f32 %v2476_v27 }
 0x287   :  { %v4503_v28 = vpop.eup %4502 }
 0x288   :  { %v4505_v29 = vpop.eup %4504  ;;  %v2490_v30 = vsel %vm1813_vm2, %v4503_v28, 0.0 }
 0x289   :  { %v2493_v31 = vsel %vm1813_vm2, %v4505_v29, 0.0  ;;  %2491 = vadd.xlane.f32.xlu0 %v2490_v30 }
 0x28a   :  { %2494 = vadd.xlane.f32.xlu1 %v2493_v31 }
 0x28f   :  { %v4507_v32 = vpop.eup %4506 }
 0x290   :  { %v4509_v33 = vpop.eup %4508  ;;  %v2496_v34 = vsel %vm1813_vm2, %v4507_v32, 0.0 }
 0x291   :  { %v2499_v35 = vsel %vm1813_vm2, %v4509_v33, 0.0  ;;  %2497 = vadd.xlane.f32.xlu0 %v2496_v34 }
 0x292   :  { %2500 = vadd.xlane.f32.xlu1 %v2499_v35 }
 0x306   :  { %v2480_v36 = vpop.xlane.xlu0 %2479 }
 0x307   :  { %4510 = vrcp.f32 %v2480_v36 }
 0x30a   :  { %v2483_v18 = vpop.xlane.xlu1 %2482 }
 0x30b   :  { %4512 = vrcp.f32 %v2483_v18 }
 0x30e   :  { %v2486_v37 = vpop.xlane.xlu0 %2485 }
 0x30f   :  { %4514 = vrcp.f32 %v2486_v37 }
 0x311   :  { %v4511_v38 = vpop.eup %4510 }
 0x312   :  { %v2503_v20 = vmul.f32 %v4511_v38, %v4495_v0  ;;  %v2489_v39 = vpop.xlane.xlu1 %2488 }
 0x313   :  { %4516 = vrcp.f32 %v2489_v39 }
 0x314   :  { %4267 = vmatmul.mubr.msk.f32.vlgmr.msra.gmra.mrb[32].mxu0 %vm1813_vm2, %v2503_v20 }
 0x315   :  { %v4513_v40 = vpop.eup %4512  ;;  %4275 = vmatpush3.msra.mxu0 %v5086_v61  ;;  %4276 = vmatprep.mubr.msk.f32.mxu0 %vm4551_vm0, %v4552_v11 }
 0x316   :  { %v2505_v41 = vmul.f32 %v4513_v40, %v4497_v13  ;;  %v2492_v42 = vpop.xlane.xlu0 %2491  ;;  %4284 = vmatprep.subr.mxu0 %v4552_v11 }
 0x317   :  { %v2495_v43 = vpop.xlane.xlu1 %2494  ;;  %4518 = vrcp.f32 %v2492_v42  ;;  %v3791_v42 = vld [vmem:[%s5233_s5] ss:$0 sm:$0xff] }
 0x318   :  { %4520 = vrcp.f32 %v2495_v43  ;;  %4272 = vmatmul.mubr.msk.f32.vlgmr.msra.gmra.mrb[32].mxu1 %vm1813_vm2, %v2505_v41 }
 0x319   :  { %v4515_v44 = vpop.eup %4514  ;;  %4280 = vmatpush3.msra.mxu1 %v5088_v63  ;;  %4281 = vmatprep.mubr.msk.f32.mxu1 %vm4551_vm0, %v4552_v11 }
 0x31a   :  { %v2507_v45 = vmul.f32 %v4515_v44, %v4499_v17  ;;  %4289 = vmatprep.subr.mxu1 %v4552_v11 }
 0x31c   :  { %4277 = vmatmul.mubr.msk.f32.vlgmr.msra.gmra.mrb[34].mxu0 %vm1813_vm2, %v2507_v45 }
 0x31d   :  { %v4517_v61 = vpop.eup %4516  ;;  %4285 = vmatpush3.msra.mxu0 %v5090_v1  ;;  %4286 = vmatprep.mubr.msk.f32.mxu0 %vm4551_vm0, %v4552_v11 }
 0x31e   :  { %v2509_v46 = vmul.f32 %v4517_v61, %v4501_v25  ;;  %v2498_v47 = vpop.xlane.xlu0 %2497  ;;  %4294 = vmatprep.subr.mxu0 %v4552_v11 }
 0x31f   :  { %v2501_v48 = vpop.xlane.xlu1 %2500  ;;  %4522 = vrcp.f32 %v2498_v47 }
 0x320   :  { %4524 = vrcp.f32 %v2501_v48  ;;  %4282 = vmatmul.mubr.msk.f32.vlgmr.msra.gmra.mrb[34].mxu1 %vm1813_vm2, %v2509_v46 }
 0x321   :  { %v4519_v63 = vpop.eup %4518  ;;  %4290 = vmatpush3.msra.mxu1 %v5092_v4  ;;  %4291 = vmatprep.mubr.msk.f32.mxu1 %vm4551_vm0, %v4552_v11 }
 0x322   :  { %v4521_v49 = vpop.eup %4520  ;;  %v2511_v1 = vmul.f32 %v4519_v63, %v4503_v28  ;;  %4299 = vmatprep.subr.mxu1 %v4552_v11 }
 0x323   :  { %v2513_v50 = vmul.f32 %v4521_v49, %v4505_v29 }
 0x324   :  { %4287 = vmatmul.mubr.msk.f32.vlgmr.msra.gmra.mrb[36].mxu0 %vm1813_vm2, %v2511_v1 }
 0x325   :  { %4292 = vmatmul.mubr.msk.f32.vlgmr.msra.gmra.mrb[36].mxu1 %vm1813_vm2, %v2513_v50  ;;  %4295 = vmatpush3.msra.mxu0 %v5094_v6  ;;  %v3102_v6 = vld [vmem:[%s5232_s4] sm:$0xff] }
 0x326   :  { %4300 = vmatpush3.msra.mxu1 %v5096_v7  ;;  %4296 = vmatprep.mubr.msk.f32.mxu0 %vm4551_vm0, %v4552_v11  ;;  %v3103_v7 = vld [vmem:[%s5232_s4 + $0x8] sm:$0xff] }
 0x327   :  { %4301 = vmatprep.mubr.msk.f32.mxu1 %vm4551_vm0, %v4552_v11  ;;  %4304 = vmatprep.subr.mxu0 %v4552_v11 }
 0x328   :  { %4309 = vmatprep.subr.mxu1 %v4552_v11 }
 0x329   :  { %v4523_v4 = vpop.eup %4522 }
 0x32a   :  { %v4525_v51 = vpop.eup %4524  ;;  %v2515_v52 = vmul.f32 %v4523_v4, %v4507_v32 }
 0x32b   :  { %v2517_v53 = vmul.f32 %v4525_v51, %v4509_v33 }
 0x32c   :  { %4297 = vmatmul.mubr.msk.f32.vlgmr.msra.gmra.mrb[38].mxu0 %vm1813_vm2, %v2515_v52 }
 0x32d   :  { %4302 = vmatmul.mubr.msk.f32.vlgmr.msra.gmra.mrb[38].mxu1 %vm1813_vm2, %v2517_v53  ;;  %4306 = vmatprep.mubr.msk.f32.mxu0 %vm4551_vm0, %v4552_v11 }
 0x32e   :  { %4311 = vmatprep.mubr.msk.f32.mxu1 %vm4551_vm0, %v4552_v11  ;;  %4305 = vmatpush3.msra.mxu0 %v3102_v6 }
 0x32f   :  { %4314 = vmatprep.subr.mxu0 %v4552_v11  ;;  %4310 = vmatpush3.msra.mxu1 %v3103_v7 }
 0x330   :  { %4319 = vmatprep.subr.mxu1 %v4552_v11 }
 0x3e7   :  { %v2587_v55 = vpop.f32.mrb[32].mxu0 }
 0x3e8   :  { %v4268_v56 = vpop.f32.mrb[33].mxu0  ;;  %4307 = vmatmul.mubr.msk.f32.vlgmr.msra.gmra.mrb[40].mxu0 %vm1813_vm2, %v2587_v55 }
 0x3e9   :  { %4315 = vmatpush3.msra.mxu0 %v3104_v54  ;;  %4316 = vmatprep.mubr.msk.f32.mxu0 %vm4551_vm0, %v4552_v11 }
 0x3ea   :  { %4324 = vmatprep.subr.mxu0 %v4552_v11 }
 0x3eb   :  { %v2660_v58 = vpop.f32.mrb[32].mxu1 }
 0x3ec   :  { %v4273_v59 = vpop.f32.mrb[33].mxu1  ;;  %4312 = vmatmul.mubr.msk.f32.vlgmr.msra.gmra.mrb[40].mxu1 %vm1813_vm2, %v2660_v58 }
 0x3ed   :  { %4320 = vmatpush3.msra.mxu1 %v3105_v57  ;;  %4321 = vmatprep.mubr.msk.f32.mxu1 %vm4551_vm0, %v4552_v11 }
 0x3ee   :  { %4329 = vmatprep.subr.mxu1 %v4552_v11 }
 0x3ef   :  { %v2733_v62 = vpop.f32.mrb[34].mxu0 }
 0x3f0   :  { %v4278_v0 = vpop.f32.mrb[35].mxu0  ;;  %4317 = vmatmul.mubr.msk.f32.vlgmr.msra.gmra.mrb[42].mxu0 %vm1813_vm2, %v2733_v62 }
 0x3f1   :  { %4325 = vmatpush3.msra.mxu0 %v3106_v60  ;;  %4326 = vmatprep.mubr.msk.f32.mxu0 %vm4551_vm0, %v4552_v11 }
 0x3f2   :  { %4334 = vmatprep.subr.mxu0 %v4552_v11 }
 0x3f3   :  { %v2806_v5 = vpop.f32.mrb[34].mxu1 }
 0x3f4   :  { %v4283_v8 = vpop.f32.mrb[35].mxu1  ;;  %4322 = vmatmul.mubr.msk.f32.vlgmr.msra.gmra.mrb[42].mxu1 %vm1813_vm2, %v2806_v5 }
 0x3f5   :  { %4330 = vmatpush3.msra.mxu1 %v3107_v2  ;;  %4331 = vmatprep.mubr.msk.f32.mxu1 %vm4551_vm0, %v4552_v11 }
 0x3f6   :  { %4339 = vmatprep.subr.mxu1 %v4552_v11 }
 0x3f7   :  { %v2879_v10 = vpop.f32.mrb[36].mxu0 }
 0x3f8   :  { %v2952_v13 = vpop.f32.mrb[36].mxu1  ;;  %v4288_v14 = vpop.f32.mrb[37].mxu0  ;;  %4327 = vmatmul.mubr.msk.f32.vlgmr.msra.gmra.mrb[44].mxu0 %vm1813_vm2, %v2879_v10 }
 0x3f9   :  { %v4293_v15 = vpop.f32.mrb[37].mxu1  ;;  %4332 = vmatmul.mubr.msk.f32.vlgmr.msra.gmra.mrb[44].mxu1 %vm1813_vm2, %v2952_v13  ;;  %4335 = vmatpush3.msra.mxu0 %v3108_v9 }
 0x3fa   :  { %4340 = vmatpush3.msra.mxu1 %v3109_v12  ;;  %4336 = vmatprep.mubr.msk.f32.mxu0 %vm4551_vm0, %v4552_v11 }
 0x3fb   :  { %4341 = vmatprep.mubr.msk.f32.mxu1 %vm4551_vm0, %v4552_v11 }
 0x3ff   :  { %v3025_v16 = vpop.f32.mrb[38].mxu0 }
 0x400   :  { %v3098_v17 = vpop.f32.mrb[38].mxu1  ;;  %v4298_v19 = vpop.f32.mrb[39].mxu0  ;;  %4337 = vmatmul.mubr.msk.f32.vlgmr.msra.gmra.mrb[46].mxu0 %vm1813_vm2, %v3025_v16 }
 0x401   :  { %v4303_v21 = vpop.f32.mrb[39].mxu1  ;;  %4342 = vmatmul.mubr.msk.f32.vlgmr.msra.gmra.mrb[46].mxu1 %vm1813_vm2, %v3098_v17 }
 0x4bb   :  { %v3179_v22 = vpop.f32.mrb[40].mxu0 }
 0x4bc   :  { %v4308_v23 = vpop.f32.mrb[41].mxu0  ;;  %v3694_v27 = vsel %vm61_vm1, %v3179_v22, 0.0 }
 0x4bf   :  { %v3252_v24 = vpop.f32.mrb[40].mxu1 }
 0x4c0   :  { %v4313_v25 = vpop.f32.mrb[41].mxu1  ;;  %v3701_v30 = vsel %vm61_vm1, %v3252_v24, 0.0 }
 0x4c3   :  { %v3325_v26 = vpop.f32.mrb[42].mxu0 }
 0x4c4   :  { %v3695_v3 = vsel %vm61_vm1, %v3325_v26, 0.0  ;;  %v4318_v28 = vpop.f32.mrb[43].mxu0 }
 0x4c5   :  { %v3696_v29 = vadd.f32 %v3695_v3, %v3694_v27 }
 0x4c7   :  { %v3398_v11 = vpop.f32.mrb[42].mxu1 }
 0x4c8   :  { %v3702_v31 = vsel %vm61_vm1, %v3398_v11, 0.0  ;;  %v4323_v32 = vpop.f32.mrb[43].mxu1 }
 0x4c9   :  { %v3703_v33 = vadd.f32 %v3702_v31, %v3701_v30 }
 0x4cb   :  { %v3471_v34 = vpop.f32.mrb[44].mxu0 }
 0x4cc   :  { %v3697_v35 = vsel %vm61_vm1, %v3471_v34, 0.0  ;;  %v3544_v36 = vpop.f32.mrb[44].mxu1  ;;  %v4328_v18 = vpop.f32.mrb[45].mxu0 }
 0x4cd   :  { %v3698_v37 = vadd.f32 %v3697_v35, %v3696_v29  ;;  %v3704_v38 = vsel %vm61_vm1, %v3544_v36, 0.0  ;;  %v4333_v20 = vpop.f32.mrb[45].mxu1 }
 0x4ce   :  { %v3705_v39 = vadd.f32 %v3704_v38, %v3703_v33 }
 0x4d3   :  { %v3617_v40 = vpop.f32.mrb[46].mxu0 }
 0x4d4   :  { %v3699_v41 = vsel %vm61_vm1, %v3617_v40, 0.0  ;;  %v3690_v43 = vpop.f32.mrb[46].mxu1  ;;  %v4338_v44 = vpop.f32.mrb[47].mxu0 }
 0x4d5   :  { %v3700_v45 = vadd.f32 %v3699_v41, %v3698_v37  ;;  %v3706_v61 = vsel %vm61_vm1, %v3690_v43, 0.0  ;;  %v4343_v46 = vpop.f32.mrb[47].mxu1 }
 0x4d6   :  { %v3707_v47 = vadd.f32 %v3706_v61, %v3705_v39 }
 0x4d7   :  { %v3715_v48 = vadd.f32 %v3791_v42, %v3700_v45 }
 0x4d8   :  { %v3716_v63 = vadd.f32 %v3791_v42, %v3707_v47 }
 0x4d9   :  { %3717 = vst.msk [vmem:[#allocation2] sm:$0xff] %vm61_vm1, %v3715_v48 }
 0x4da   :  { %3718 = vst.msk [vmem:[#allocation2 + $0x8] sm:$0xff] %vm61_vm1, %v3716_v63 }
 0x4db   :  { %4537 = shalt.err (!%p4534_p4)
}
 0x4dc   :  { %s4538_s16 = scalar_lea.hbm %s5235_s7, 256 }
 0x4dd   :  { %p4539_p5 = scmp.ne.s32.totalorder %s5235_s7, %s4538_s16  ;;  %p4542_p6 = scmp.lt.u32.totalorder %s4538_s16, %s5235_s7 }
 0x4df   :  { %p4544_p7 = pnand %p4542_p6, %p4539_p5 }
 0x4e1   :  { %4547 = shalt.err (!%p4544_p7)
}
 0x4e2   :  { %s4554_s3 = smov 128   ;;  %s4555_s21 = smov 8  }
 0x4e3   :  { %3730 = dma.vmem_to_hbm [thread:$0]  %s3725_s2, 256, %s5235_s7, [#allocation3], %s4554_s3, %s4554_s3, %s4555_s21  }
 0x4e4   :  { %4548 = dma.done.wait [#allocation3], 256  }
 0x4e5   :  { %4549 = vsyncadd [#allocation3], 4294967040 }
 0x4e6   :  { %3734 = vsyncpa [#allocation3], 1 }

</bundles_post_ra>
